<compile_context>
chip_gen: v7x
topology: tpu7x:2x2x1
jax: 0.10.0
libtpu: 0.0.40
codegen_flags: <defaults>
</compile_context>

<pallas_src>
import functools

import jax
import jax.numpy as jnp
from jax import lax
from jax.experimental import pallas as pl
from jax.experimental.pallas import tpu as pltpu


def _segse_kernel(x_ref, w_ref, b_ref, o_ref, xcol_ref, *, H, W, rate, nb, front):
    # x_ref   : (nb, C, Lbuf)   flat, H-halo-padded input (spatial on lanes), f32
    # w_ref   : (C, 9*C)        folded conv weights (w2 @ w1_col), bf16
    # b_ref   : (C, 1)          folded bias (w2 @ b1 + b2), f32
    # o_ref   : (nb, C, H*W)
    # xcol_ref: (9*C, nb*H*W)   VMEM scratch for the im2col operand, f32
    HW = H * W
    C = x_ref.shape[1]

    # W-edge masks: the flat buffer only zero-pads the H halo; reads that fall
    # off a row's left/right edge wrap into the neighbouring row and must be
    # zeroed. Mask depends only on lane % W -> build it (1, HW) and broadcast.
    w_idx = lax.broadcasted_iota(jnp.int32, (1, HW), 1) % W
    mask_lo = w_idx >= rate            # valid region for kw == 0 (shift -rate)
    mask_hi = w_idx < (W - rate)       # valid region for kw == 2 (shift +rate)

    # Build im2col operand directly in VMEM scratch: 9 shifted taps stacked
    # along K (row offset t*C), spatial (lane-dense) along N.
    for b in range(nb):
        for kh in range(3):
            for kw in range(3):
                t = kh * 3 + kw
                start = front + (kh - 1) * rate * W + (kw - 1) * rate
                tap = x_ref[b, :, start:start + HW]          # (C, HW)
                if kw == 0:
                    tap = jnp.where(mask_lo, tap, 0.0)
                elif kw == 2:
                    tap = jnp.where(mask_hi, tap, 0.0)
                xcol_ref[t * C:(t + 1) * C, b * HW:(b + 1) * HW] = tap

    xcol = xcol_ref[...].astype(jnp.bfloat16)                # (9*C, nb*HW)

    # Folded (dilated-3x3 + 1x1) conv: one bf16 MXU matmul, f32 accumulation.
    y = lax.dot_general(w_ref[...], xcol,
                        dimension_numbers=(((1,), (0,)), ((), ())),
                        preferred_element_type=jnp.float32)
    y = y + b_ref[...]                                       # (C, nb*HW), f32

    out = jax.nn.sigmoid(y)                                  # EUP, f32

    for b in range(nb):
        o_ref[b] = out[:, b * HW:(b + 1) * HW].astype(o_ref.dtype)


def seg_se_block(x_nchw, w1_oihw, b1, w2_oihw, b2, *, rate=2, nb=None):
    """x_nchw: (N, C, H, W) float32. Returns (N, C, H, W). nb must divide N."""
    N, C, H, W = x_nchw.shape
    c_mid = C // rate
    HW = H * W

    if nb is None:
        # Target >= ~512 lanes per grid step (amortizes the ~0.35us per-step
        # overhead; wide unmasked lane-dense stores). On v7x (2 TensorCores)
        # prefer keeping N // nb >= 2 so "parallel" shards the grid.
        nb = 1
        while nb < N and nb * HW < 512 and N % (2 * nb) == 0:
            nb *= 2
    assert N % nb == 0, "nb must divide the batch size"

    # Flat-index reach of the conv halo (H and W halos combined).
    halo = rate * W + rate
    lbuf = -(-(HW + 2 * halo) // 128) * 128   # round lane length up to 128
    front = halo

    # Single pad on the flattened spatial axis (no NCHW<->NHWC transposes).
    x_flat = x_nchw.reshape(N, C, HW)
    x_buf = jnp.pad(x_flat, ((0, 0), (0, 0), (front, lbuf - HW - front)))

    # PyTorch OIHW -> im2col (Cmid, 9*C), tap ordering t = kh*3 + kw major,
    # input channel minor — matches the kernel's xcol row layout. Then fold the
    # 1x1 conv:  W_eff = w2 @ w1_col  (C, 9C),  b_eff = w2 @ b1 + b2.
    # (Fold is the right call for small C / overhead-bound shapes; for C >~ 128
    # keep the two-matmul path since FLOPs grow 5C^2 -> 9C^2.)
    w1_col = jnp.transpose(w1_oihw, (0, 2, 3, 1)).reshape(c_mid, 9 * C)
    w2_mat = w2_oihw[:, :, 0, 0]                                    # (C, Cmid)
    w_eff = (w2_mat @ w1_col).astype(jnp.bfloat16)                  # (C, 9*C)
    b_eff = (w2_mat @ b1 + b2).reshape(C, 1).astype(jnp.float32)    # (C, 1)

    kernel = functools.partial(_segse_kernel, H=H, W=W, rate=rate, nb=nb,
                               front=front)

    out_flat = pl.pallas_call(
        kernel,
        out_shape=jax.ShapeDtypeStruct((N, C, HW), x_nchw.dtype),
        grid_spec=pltpu.PrefetchScalarGridSpec(
            num_scalar_prefetch=0,
            grid=(N // nb,),
            in_specs=[
                pl.BlockSpec((nb, C, lbuf), lambda n: (n, 0, 0)),
                pl.BlockSpec((C, 9 * C), lambda n: (0, 0)),
                pl.BlockSpec((C, 1), lambda n: (0, 0)),
            ],
            out_specs=pl.BlockSpec((nb, C, HW), lambda n: (n, 0, 0)),
            scratch_shapes=[pltpu.VMEM((9 * C, nb * HW), jnp.float32)],
        ),
        compiler_params=pltpu.CompilerParams(
            dimension_semantics=("parallel",)),
    )(x_buf, w_eff, b_eff)

    return out_flat.reshape(N, C, H, W)   # free reshape (splits last dim)


def _reference(x_nchw, w1_oihw, b1, w2_oihw, b2, *, rate=2):
    """Pure-JAX reference matching PyTorch Conv2d semantics (NCHW, f32)."""
    y = lax.conv_general_dilated(
        x_nchw, w1_oihw,
        window_strides=(1, 1),
        padding=((rate, rate), (rate, rate)),
        rhs_dilation=(rate, rate),
        dimension_numbers=("NCHW", "OIHW", "NCHW"))
    y = y + b1[None, :, None, None]
    z = lax.conv_general_dilated(
        y, w2_oihw,
        window_strides=(1, 1),
        padding=((0, 0), (0, 0)),
        dimension_numbers=("NCHW", "OIHW", "NCHW"))
    z = z + b2[None, :, None, None]
    return jax.nn.sigmoid(z)


if __name__ == "__main__":
    N, C, H, W = 2, 4, 16, 16
    rate = 2
    c_mid = C // rate

    key = jax.random.PRNGKey(0)
    kx, k1, kb1, k2, kb2 = jax.random.split(key, 5)

    x = jax.random.normal(kx, (N, C, H, W), dtype=jnp.float32)
    # Deterministic synthetic parameters (PyTorch-shaped: OIHW + per-O bias).
    w1 = jax.random.normal(k1, (c_mid, C, 3, 3), dtype=jnp.float32) * 0.1
    b1 = jax.random.normal(kb1, (c_mid,), dtype=jnp.float32) * 0.1
    w2 = jax.random.normal(k2, (C, c_mid, 1, 1), dtype=jnp.float32) * 0.1
    b2 = jax.random.normal(kb2, (C,), dtype=jnp.float32) * 0.1

    out = seg_se_block(x, w1, b1, w2, b2, rate=rate)
    out = jax.block_until_ready(out)

    ref = _reference(x, w1, b1, w2, b2, rate=rate)
    assert out.shape == (N, C, H, W)
    # bf16 MXU operands + conv fold -> rounding-level differences vs f32 ref.
    assert jnp.allclose(out, ref, atol=2e-2, rtol=2e-2), "mismatch vs reference"

    print("KERNEL_OK")
</pallas_src>

<mosaic_0001>
module attributes {stable_mosaic.version = 11 : i64} {
  func.func @_segse_kernel(%arg0: i32, %arg1: memref<2x4x384xf32, #tpu.memory_space<vmem>>, %arg2: memref<4x36xbf16, #tpu.memory_space<vmem>>, %arg3: memref<4x1xf32, #tpu.memory_space<vmem>>, %arg4: memref<2x4x256xf32, #tpu.memory_space<vmem>>, %arg5: memref<36x512xf32, #tpu.memory_space<vmem>>) attributes {dimension_semantics = [#tpu.dimension_semantics<parallel>], iteration_bounds = array<i64: 1>, scalar_prefetch = 0 : i64, scratch_operands = 1 : i64, tpu.core_type = #tpu.core_type<tc>, window_params = [{transform_indices = @transform_0, window_bounds = array<i64: 2, 4, 384>}, {pipeline_mode = #tpu.pipeline_mode<synchronous>, transform_indices = @transform_1, window_bounds = array<i64: 4, 36>}, {pipeline_mode = #tpu.pipeline_mode<synchronous>, transform_indices = @transform_2, window_bounds = array<i64: 4, 1>}, {transform_indices = @transform_3, window_bounds = array<i64: 2, 4, 256>}]} {
    %0 = tpu.iota {dimensions = array<i32: 1>} : vector<1x256xi32>
    %c16_i32 = arith.constant 16 : i32
    %c0_i32 = arith.constant 0 : i32
    %1 = arith.cmpi eq, %c16_i32, %c0_i32 : i32
    %c1_i32 = arith.constant 1 : i32
    %2 = arith.select %1, %c1_i32, %c16_i32 : i32
    %3 = vector.broadcast %2 : i32 to vector<1x256xi32>
    %4 = arith.remsi %0, %3 : vector<1x256xi32>
    %c0_i32_0 = arith.constant 0 : i32
    %5 = vector.broadcast %c0_i32_0 : i32 to vector<1x256xi32>
    %6 = arith.cmpi ne, %4, %5 : vector<1x256xi32>
    %c0_i32_1 = arith.constant 0 : i32
    %7 = vector.broadcast %c0_i32_1 : i32 to vector<1x256xi32>
    %8 = arith.cmpi slt, %4, %7 : vector<1x256xi32>
    %c0_i32_2 = arith.constant 0 : i32
    %9 = arith.cmpi slt, %2, %c0_i32_2 : i32
    %10 = vector.broadcast %9 : i1 to vector<1x256xi1>
    %11 = vector.broadcast %10 : vector<1x256xi1> to vector<1x256xi1>
    %12 = arith.xori %8, %11 : vector<1x256xi1>
    %13 = arith.andi %12, %6 : vector<1x256xi1>
    %14 = vector.broadcast %2 : i32 to vector<1x256xi32>
    %15 = arith.addi %4, %14 : vector<1x256xi32>
    %16 = arith.select %13, %15, %4 : vector<1x256xi1>, vector<1x256xi32>
    %c2_i32 = arith.constant 2 : i32
    %17 = vector.broadcast %c2_i32 : i32 to vector<1x256xi32>
    %18 = arith.cmpi sge, %16, %17 : vector<1x256xi32>
    %c14_i32 = arith.constant 14 : i32
    %19 = vector.broadcast %c14_i32 : i32 to vector<1x256xi32>
    %20 = arith.cmpi slt, %16, %19 : vector<1x256xi32>
    %c0 = arith.constant 0 : index
    %c0_3 = arith.constant 0 : index
    %c0_4 = arith.constant 0 : index
    %21 = vector.load %arg1[%c0, %c0_3, %c0_4] : memref<2x4x384xf32, #tpu.memory_space<vmem>>, vector<1x4x256xf32>
    %22 = vector.shape_cast %21 : vector<1x4x256xf32> to vector<4x256xf32>
    %cst = arith.constant 0.000000e+00 : f32
    %23 = vector.shape_cast %18 : vector<1x256xi1> to vector<1x256xi1>
    %24 = vector.broadcast %23 : vector<1x256xi1> to vector<4x256xi1>
    %25 = vector.broadcast %cst : f32 to vector<4x256xf32>
    %26 = arith.select %24, %22, %25 : vector<4x256xi1>, vector<4x256xf32>
    %c0_5 = arith.constant 0 : index
    %c0_6 = arith.constant 0 : index
    %27 = vector.load %arg5[%c0_5, %c0_6] : memref<36x512xf32, #tpu.memory_space<vmem>>, vector<4x256xf32>
    tpu.vector_store %arg5[%c0_5, %c0_6], %26 {strides = array<i32>} : memref<36x512xf32, #tpu.memory_space<vmem>>, vector<4x256xf32>,
    %c0_7 = arith.constant 0 : index
    %c0_8 = arith.constant 0 : index
    %c2 = arith.constant 2 : index
    %28 = vector.load %arg1[%c0_7, %c0_8, %c2] : memref<2x4x384xf32, #tpu.memory_space<vmem>>, vector<1x4x256xf32>
    %29 = vector.shape_cast %28 : vector<1x4x256xf32> to vector<4x256xf32>
    %c4 = arith.constant 4 : index
    %c0_9 = arith.constant 0 : index
    %30 = vector.load %arg5[%c4, %c0_9] : memref<36x512xf32, #tpu.memory_space<vmem>>, vector<4x256xf32>
    tpu.vector_store %arg5[%c4, %c0_9], %29 {strides = array<i32>} : memref<36x512xf32, #tpu.memory_space<vmem>>, vector<4x256xf32>,
    %c0_10 = arith.constant 0 : index
    %c0_11 = arith.constant 0 : index
    %c4_12 = arith.constant 4 : index
    %31 = vector.load %arg1[%c0_10, %c0_11, %c4_12] : memref<2x4x384xf32, #tpu.memory_space<vmem>>, vector<1x4x256xf32>
    %32 = vector.shape_cast %31 : vector<1x4x256xf32> to vector<4x256xf32>
    %cst_13 = arith.constant 0.000000e+00 : f32
    %33 = vector.shape_cast %20 : vector<1x256xi1> to vector<1x256xi1>
    %34 = vector.broadcast %33 : vector<1x256xi1> to vector<4x256xi1>
    %35 = vector.broadcast %cst_13 : f32 to vector<4x256xf32>
    %36 = arith.select %34, %32, %35 : vector<4x256xi1>, vector<4x256xf32>
    %c8 = arith.constant 8 : index
    %c0_14 = arith.constant 0 : index
    %37 = vector.load %arg5[%c8, %c0_14] : memref<36x512xf32, #tpu.memory_space<vmem>>, vector<4x256xf32>
    tpu.vector_store %arg5[%c8, %c0_14], %36 {strides = array<i32>} : memref<36x512xf32, #tpu.memory_space<vmem>>, vector<4x256xf32>,
    %c0_15 = arith.constant 0 : index
    %c0_16 = arith.constant 0 : index
    %c32 = arith.constant 32 : index
    %38 = vector.load %arg1[%c0_15, %c0_16, %c32] : memref<2x4x384xf32, #tpu.memory_space<vmem>>, vector<1x4x256xf32>
    %39 = vector.shape_cast %38 : vector<1x4x256xf32> to vector<4x256xf32>
    %cst_17 = arith.constant 0.000000e+00 : f32
    %40 = vector.shape_cast %18 : vector<1x256xi1> to vector<1x256xi1>
    %41 = vector.broadcast %40 : vector<1x256xi1> to vector<4x256xi1>
    %42 = vector.broadcast %cst_17 : f32 to vector<4x256xf32>
    %43 = arith.select %41, %39, %42 : vector<4x256xi1>, vector<4x256xf32>
    %c12 = arith.constant 12 : index
    %c0_18 = arith.constant 0 : index
    %44 = vector.load %arg5[%c12, %c0_18] : memref<36x512xf32, #tpu.memory_space<vmem>>, vector<4x256xf32>
    tpu.vector_store %arg5[%c12, %c0_18], %43 {strides = array<i32>} : memref<36x512xf32, #tpu.memory_space<vmem>>, vector<4x256xf32>,
    %c0_19 = arith.constant 0 : index
    %c0_20 = arith.constant 0 : index
    %c34 = arith.constant 34 : index
    %45 = vector.load %arg1[%c0_19, %c0_20, %c34] : memref<2x4x384xf32, #tpu.memory_space<vmem>>, vector<1x4x256xf32>
    %46 = vector.shape_cast %45 : vector<1x4x256xf32> to vector<4x256xf32>
    %c16 = arith.constant 16 : index
    %c0_21 = arith.constant 0 : index
    %47 = vector.load %arg5[%c16, %c0_21] : memref<36x512xf32, #tpu.memory_space<vmem>>, vector<4x256xf32>
    tpu.vector_store %arg5[%c16, %c0_21], %46 {strides = array<i32>} : memref<36x512xf32, #tpu.memory_space<vmem>>, vector<4x256xf32>,
    %c0_22 = arith.constant 0 : index
    %c0_23 = arith.constant 0 : index
    %c36 = arith.constant 36 : index
    %48 = vector.load %arg1[%c0_22, %c0_23, %c36] : memref<2x4x384xf32, #tpu.memory_space<vmem>>, vector<1x4x256xf32>
    %49 = vector.shape_cast %48 : vector<1x4x256xf32> to vector<4x256xf32>
    %cst_24 = arith.constant 0.000000e+00 : f32
    %50 = vector.shape_cast %20 : vector<1x256xi1> to vector<1x256xi1>
    %51 = vector.broadcast %50 : vector<1x256xi1> to vector<4x256xi1>
    %52 = vector.broadcast %cst_24 : f32 to vector<4x256xf32>
    %53 = arith.select %51, %49, %52 : vector<4x256xi1>, vector<4x256xf32>
    %c20 = arith.constant 20 : index
    %c0_25 = arith.constant 0 : index
    %54 = vector.load %arg5[%c20, %c0_25] : memref<36x512xf32, #tpu.memory_space<vmem>>, vector<4x256xf32>
    tpu.vector_store %arg5[%c20, %c0_25], %53 {strides = array<i32>} : memref<36x512xf32, #tpu.memory_space<vmem>>, vector<4x256xf32>,
    %c0_26 = arith.constant 0 : index
    %c0_27 = arith.constant 0 : index
    %c64 = arith.constant 64 : index
    %55 = vector.load %arg1[%c0_26, %c0_27, %c64] : memref<2x4x384xf32, #tpu.memory_space<vmem>>, vector<1x4x256xf32>
    %56 = vector.shape_cast %55 : vector<1x4x256xf32> to vector<4x256xf32>
    %cst_28 = arith.constant 0.000000e+00 : f32
    %57 = vector.shape_cast %18 : vector<1x256xi1> to vector<1x256xi1>
    %58 = vector.broadcast %57 : vector<1x256xi1> to vector<4x256xi1>
    %59 = vector.broadcast %cst_28 : f32 to vector<4x256xf32>
    %60 = arith.select %58, %56, %59 : vector<4x256xi1>, vector<4x256xf32>
    %c24 = arith.constant 24 : index
    %c0_29 = arith.constant 0 : index
    %61 = vector.load %arg5[%c24, %c0_29] : memref<36x512xf32, #tpu.memory_space<vmem>>, vector<4x256xf32>
    tpu.vector_store %arg5[%c24, %c0_29], %60 {strides = array<i32>} : memref<36x512xf32, #tpu.memory_space<vmem>>, vector<4x256xf32>,
    %c0_30 = arith.constant 0 : index
    %c0_31 = arith.constant 0 : index
    %c66 = arith.constant 66 : index
    %62 = vector.load %arg1[%c0_30, %c0_31, %c66] : memref<2x4x384xf32, #tpu.memory_space<vmem>>, vector<1x4x256xf32>
    %63 = vector.shape_cast %62 : vector<1x4x256xf32> to vector<4x256xf32>
    %c28 = arith.constant 28 : index
    %c0_32 = arith.constant 0 : index
    %64 = vector.load %arg5[%c28, %c0_32] : memref<36x512xf32, #tpu.memory_space<vmem>>, vector<4x256xf32>
    tpu.vector_store %arg5[%c28, %c0_32], %63 {strides = array<i32>} : memref<36x512xf32, #tpu.memory_space<vmem>>, vector<4x256xf32>,
    %c0_33 = arith.constant 0 : index
    %c0_34 = arith.constant 0 : index
    %c68 = arith.constant 68 : index
    %65 = vector.load %arg1[%c0_33, %c0_34, %c68] : memref<2x4x384xf32, #tpu.memory_space<vmem>>, vector<1x4x256xf32>
    %66 = vector.shape_cast %65 : vector<1x4x256xf32> to vector<4x256xf32>
    %cst_35 = arith.constant 0.000000e+00 : f32
    %67 = vector.shape_cast %20 : vector<1x256xi1> to vector<1x256xi1>
    %68 = vector.broadcast %67 : vector<1x256xi1> to vector<4x256xi1>
    %69 = vector.broadcast %cst_35 : f32 to vector<4x256xf32>
    %70 = arith.select %68, %66, %69 : vector<4x256xi1>, vector<4x256xf32>
    %c32_36 = arith.constant 32 : index
    %c0_37 = arith.constant 0 : index
    %71 = vector.load %arg5[%c32_36, %c0_37] : memref<36x512xf32, #tpu.memory_space<vmem>>, vector<4x256xf32>
    tpu.vector_store %arg5[%c32_36, %c0_37], %70 {strides = array<i32>} : memref<36x512xf32, #tpu.memory_space<vmem>>, vector<4x256xf32>,
    %c1 = arith.constant 1 : index
    %c0_38 = arith.constant 0 : index
    %c0_39 = arith.constant 0 : index
    %72 = vector.load %arg1[%c1, %c0_38, %c0_39] : memref<2x4x384xf32, #tpu.memory_space<vmem>>, vector<1x4x256xf32>
    %73 = vector.shape_cast %72 : vector<1x4x256xf32> to vector<4x256xf32>
    %cst_40 = arith.constant 0.000000e+00 : f32
    %74 = vector.shape_cast %18 : vector<1x256xi1> to vector<1x256xi1>
    %75 = vector.broadcast %74 : vector<1x256xi1> to vector<4x256xi1>
    %76 = vector.broadcast %cst_40 : f32 to vector<4x256xf32>
    %77 = arith.select %75, %73, %76 : vector<4x256xi1>, vector<4x256xf32>
    %c0_41 = arith.constant 0 : index
    %c256 = arith.constant 256 : index
    %78 = vector.load %arg5[%c0_41, %c256] : memref<36x512xf32, #tpu.memory_space<vmem>>, vector<4x256xf32>
    tpu.vector_store %arg5[%c0_41, %c256], %77 {strides = array<i32>} : memref<36x512xf32, #tpu.memory_space<vmem>>, vector<4x256xf32>,
    %c1_42 = arith.constant 1 : index
    %c0_43 = arith.constant 0 : index
    %c2_44 = arith.constant 2 : index
    %79 = vector.load %arg1[%c1_42, %c0_43, %c2_44] : memref<2x4x384xf32, #tpu.memory_space<vmem>>, vector<1x4x256xf32>
    %80 = vector.shape_cast %79 : vector<1x4x256xf32> to vector<4x256xf32>
    %c4_45 = arith.constant 4 : index
    %c256_46 = arith.constant 256 : index
    %81 = vector.load %arg5[%c4_45, %c256_46] : memref<36x512xf32, #tpu.memory_space<vmem>>, vector<4x256xf32>
    tpu.vector_store %arg5[%c4_45, %c256_46], %80 {strides = array<i32>} : memref<36x512xf32, #tpu.memory_space<vmem>>, vector<4x256xf32>,
    %c1_47 = arith.constant 1 : index
    %c0_48 = arith.constant 0 : index
    %c4_49 = arith.constant 4 : index
    %82 = vector.load %arg1[%c1_47, %c0_48, %c4_49] : memref<2x4x384xf32, #tpu.memory_space<vmem>>, vector<1x4x256xf32>
    %83 = vector.shape_cast %82 : vector<1x4x256xf32> to vector<4x256xf32>
    %cst_50 = arith.constant 0.000000e+00 : f32
    %84 = vector.shape_cast %20 : vector<1x256xi1> to vector<1x256xi1>
    %85 = vector.broadcast %84 : vector<1x256xi1> to vector<4x256xi1>
    %86 = vector.broadcast %cst_50 : f32 to vector<4x256xf32>
    %87 = arith.select %85, %83, %86 : vector<4x256xi1>, vector<4x256xf32>
    %c8_51 = arith.constant 8 : index
    %c256_52 = arith.constant 256 : index
    %88 = vector.load %arg5[%c8_51, %c256_52] : memref<36x512xf32, #tpu.memory_space<vmem>>, vector<4x256xf32>
    tpu.vector_store %arg5[%c8_51, %c256_52], %87 {strides = array<i32>} : memref<36x512xf32, #tpu.memory_space<vmem>>, vector<4x256xf32>,
    %c1_53 = arith.constant 1 : index
    %c0_54 = arith.constant 0 : index
    %c32_55 = arith.constant 32 : index
    %89 = vector.load %arg1[%c1_53, %c0_54, %c32_55] : memref<2x4x384xf32, #tpu.memory_space<vmem>>, vector<1x4x256xf32>
    %90 = vector.shape_cast %89 : vector<1x4x256xf32> to vector<4x256xf32>
    %cst_56 = arith.constant 0.000000e+00 : f32
    %91 = vector.shape_cast %18 : vector<1x256xi1> to vector<1x256xi1>
    %92 = vector.broadcast %91 : vector<1x256xi1> to vector<4x256xi1>
    %93 = vector.broadcast %cst_56 : f32 to vector<4x256xf32>
    %94 = arith.select %92, %90, %93 : vector<4x256xi1>, vector<4x256xf32>
    %c12_57 = arith.constant 12 : index
    %c256_58 = arith.constant 256 : index
    %95 = vector.load %arg5[%c12_57, %c256_58] : memref<36x512xf32, #tpu.memory_space<vmem>>, vector<4x256xf32>
    tpu.vector_store %arg5[%c12_57, %c256_58], %94 {strides = array<i32>} : memref<36x512xf32, #tpu.memory_space<vmem>>, vector<4x256xf32>,
    %c1_59 = arith.constant 1 : index
    %c0_60 = arith.constant 0 : index
    %c34_61 = arith.constant 34 : index
    %96 = vector.load %arg1[%c1_59, %c0_60, %c34_61] : memref<2x4x384xf32, #tpu.memory_space<vmem>>, vector<1x4x256xf32>
    %97 = vector.shape_cast %96 : vector<1x4x256xf32> to vector<4x256xf32>
    %c16_62 = arith.constant 16 : index
    %c256_63 = arith.constant 256 : index
    %98 = vector.load %arg5[%c16_62, %c256_63] : memref<36x512xf32, #tpu.memory_space<vmem>>, vector<4x256xf32>
    tpu.vector_store %arg5[%c16_62, %c256_63], %97 {strides = array<i32>} : memref<36x512xf32, #tpu.memory_space<vmem>>, vector<4x256xf32>,
    %c1_64 = arith.constant 1 : index
    %c0_65 = arith.constant 0 : index
    %c36_66 = arith.constant 36 : index
    %99 = vector.load %arg1[%c1_64, %c0_65, %c36_66] : memref<2x4x384xf32, #tpu.memory_space<vmem>>, vector<1x4x256xf32>
    %100 = vector.shape_cast %99 : vector<1x4x256xf32> to vector<4x256xf32>
    %cst_67 = arith.constant 0.000000e+00 : f32
    %101 = vector.shape_cast %20 : vector<1x256xi1> to vector<1x256xi1>
    %102 = vector.broadcast %101 : vector<1x256xi1> to vector<4x256xi1>
    %103 = vector.broadcast %cst_67 : f32 to vector<4x256xf32>
    %104 = arith.select %102, %100, %103 : vector<4x256xi1>, vector<4x256xf32>
    %c20_68 = arith.constant 20 : index
    %c256_69 = arith.constant 256 : index
    %105 = vector.load %arg5[%c20_68, %c256_69] : memref<36x512xf32, #tpu.memory_space<vmem>>, vector<4x256xf32>
    tpu.vector_store %arg5[%c20_68, %c256_69], %104 {strides = array<i32>} : memref<36x512xf32, #tpu.memory_space<vmem>>, vector<4x256xf32>,
    %c1_70 = arith.constant 1 : index
    %c0_71 = arith.constant 0 : index
    %c64_72 = arith.constant 64 : index
    %106 = vector.load %arg1[%c1_70, %c0_71, %c64_72] : memref<2x4x384xf32, #tpu.memory_space<vmem>>, vector<1x4x256xf32>
    %107 = vector.shape_cast %106 : vector<1x4x256xf32> to vector<4x256xf32>
    %cst_73 = arith.constant 0.000000e+00 : f32
    %108 = vector.shape_cast %18 : vector<1x256xi1> to vector<1x256xi1>
    %109 = vector.broadcast %108 : vector<1x256xi1> to vector<4x256xi1>
    %110 = vector.broadcast %cst_73 : f32 to vector<4x256xf32>
    %111 = arith.select %109, %107, %110 : vector<4x256xi1>, vector<4x256xf32>
    %c24_74 = arith.constant 24 : index
    %c256_75 = arith.constant 256 : index
    %112 = vector.load %arg5[%c24_74, %c256_75] : memref<36x512xf32, #tpu.memory_space<vmem>>, vector<4x256xf32>
    tpu.vector_store %arg5[%c24_74, %c256_75], %111 {strides = array<i32>} : memref<36x512xf32, #tpu.memory_space<vmem>>, vector<4x256xf32>,
    %c1_76 = arith.constant 1 : index
    %c0_77 = arith.constant 0 : index
    %c66_78 = arith.constant 66 : index
    %113 = vector.load %arg1[%c1_76, %c0_77, %c66_78] : memref<2x4x384xf32, #tpu.memory_space<vmem>>, vector<1x4x256xf32>
    %114 = vector.shape_cast %113 : vector<1x4x256xf32> to vector<4x256xf32>
    %c28_79 = arith.constant 28 : index
    %c256_80 = arith.constant 256 : index
    %115 = vector.load %arg5[%c28_79, %c256_80] : memref<36x512xf32, #tpu.memory_space<vmem>>, vector<4x256xf32>
    tpu.vector_store %arg5[%c28_79, %c256_80], %114 {strides = array<i32>} : memref<36x512xf32, #tpu.memory_space<vmem>>, vector<4x256xf32>,
    %c1_81 = arith.constant 1 : index
    %c0_82 = arith.constant 0 : index
    %c68_83 = arith.constant 68 : index
    %116 = vector.load %arg1[%c1_81, %c0_82, %c68_83] : memref<2x4x384xf32, #tpu.memory_space<vmem>>, vector<1x4x256xf32>
    %117 = vector.shape_cast %116 : vector<1x4x256xf32> to vector<4x256xf32>
    %cst_84 = arith.constant 0.000000e+00 : f32
    %118 = vector.shape_cast %20 : vector<1x256xi1> to vector<1x256xi1>
    %119 = vector.broadcast %118 : vector<1x256xi1> to vector<4x256xi1>
    %120 = vector.broadcast %cst_84 : f32 to vector<4x256xf32>
    %121 = arith.select %119, %117, %120 : vector<4x256xi1>, vector<4x256xf32>
    %c32_85 = arith.constant 32 : index
    %c256_86 = arith.constant 256 : index
    %122 = vector.load %arg5[%c32_85, %c256_86] : memref<36x512xf32, #tpu.memory_space<vmem>>, vector<4x256xf32>
    tpu.vector_store %arg5[%c32_85, %c256_86], %121 {strides = array<i32>} : memref<36x512xf32, #tpu.memory_space<vmem>>, vector<4x256xf32>,
    %c0_87 = arith.constant 0 : index
    %c0_88 = arith.constant 0 : index
    %123 = vector.load %arg5[%c0_87, %c0_88] : memref<36x512xf32, #tpu.memory_space<vmem>>, vector<36x512xf32>
    %124 = arith.truncf %123 : vector<36x512xf32> to vector<36x512xbf16>
    %c0_89 = arith.constant 0 : index
    %c0_90 = arith.constant 0 : index
    %125 = vector.load %arg2[%c0_89, %c0_90] : memref<4x36xbf16, #tpu.memory_space<vmem>>, vector<4x36xbf16>
    %cst_91 = arith.constant dense<0.000000e+00> : vector<4x512xf32>
    %126 = tpu.matmul %125, %124, %cst_91 {dimension_numbers = #tpu.dot_dimension_numbers<[1], [0], [0], [1], [0, 0, 1, 1], [], []>} : vector<4x36xbf16>, vector<36x512xbf16>, vector<4x512xf32> -> vector<4x512xf32>
    %c0_92 = arith.constant 0 : index
    %c0_93 = arith.constant 0 : index
    %127 = vector.load %arg3[%c0_92, %c0_93] : memref<4x1xf32, #tpu.memory_space<vmem>>, vector<4x1xf32>
    %128 = vector.broadcast %127 : vector<4x1xf32> to vector<4x512xf32>
    %129 = arith.addf %126, %128 : vector<4x512xf32>
    %130 = arith.negf %129 : vector<4x512xf32>
    %131 = math.exp %130 : vector<4x512xf32>
    %cst_94 = arith.constant 1.000000e+00 : f32
    %132 = vector.broadcast %cst_94 : f32 to vector<4x512xf32>
    %133 = arith.addf %132, %131 : vector<4x512xf32>
    %134 = arith.divf %132, %133 : vector<4x512xf32>
    %135 = vector.extract_strided_slice %134 {offsets = [0, 0], sizes = [4, 256], strides = [1, 1]} : vector<4x512xf32> to vector<4x256xf32>
    %c0_95 = arith.constant 0 : index
    %c0_96 = arith.constant 0 : index
    %c0_97 = arith.constant 0 : index
    %136 = vector.load %arg4[%c0_95, %c0_96, %c0_97] : memref<2x4x256xf32, #tpu.memory_space<vmem>>, vector<1x4x256xf32>
    %137 = vector.shape_cast %136 : vector<1x4x256xf32> to vector<4x256xf32>
    %138 = vector.shape_cast %135 : vector<4x256xf32> to vector<1x4x256xf32>
    tpu.vector_store %arg4[%c0_95, %c0_96, %c0_97], %138 {strides = array<i32>} : memref<2x4x256xf32, #tpu.memory_space<vmem>>, vector<1x4x256xf32>,
    %139 = vector.extract_strided_slice %134 {offsets = [0, 256], sizes = [4, 256], strides = [1, 1]} : vector<4x512xf32> to vector<4x256xf32>
    %c1_98 = arith.constant 1 : index
    %c0_99 = arith.constant 0 : index
    %c0_100 = arith.constant 0 : index
    %140 = vector.load %arg4[%c1_98, %c0_99, %c0_100] : memref<2x4x256xf32, #tpu.memory_space<vmem>>, vector<1x4x256xf32>
    %141 = vector.shape_cast %140 : vector<1x4x256xf32> to vector<4x256xf32>
    %142 = vector.shape_cast %139 : vector<4x256xf32> to vector<1x4x256xf32>
    tpu.vector_store %arg4[%c1_98, %c0_99, %c0_100], %142 {strides = array<i32>} : memref<2x4x256xf32, #tpu.memory_space<vmem>>, vector<1x4x256xf32>,
    return
  }
  func.func @transform_0(%arg0: i32) -> (i32, i32, i32) {
    %c0_i32 = arith.constant 0 : i32
    %c0_i32_0 = arith.constant 0 : i32
    %c0_i32_1 = arith.constant 0 : i32
    return %arg0, %c0_i32, %c0_i32_0 : i32, i32, i32
  }
  func.func @transform_1(%arg0: i32) -> (i32, i32) {
    %c0_i32 = arith.constant 0 : i32
    %c0_i32_0 = arith.constant 0 : i32
    %c0_i32_1 = arith.constant 0 : i32
    return %c0_i32, %c0_i32_0 : i32, i32
  }
  func.func @transform_2(%arg0: i32) -> (i32, i32) {
    %c0_i32 = arith.constant 0 : i32
    %c0_i32_0 = arith.constant 0 : i32
    %c0_i32_1 = arith.constant 0 : i32
    return %c0_i32, %c0_i32_0 : i32, i32
  }
  func.func @transform_3(%arg0: i32) -> (i32, i32, i32) {
    %c0_i32 = arith.constant 0 : i32
    %c0_i32_0 = arith.constant 0 : i32
    %c0_i32_1 = arith.constant 0 : i32
    return %arg0, %c0_i32, %c0_i32_0 : i32, i32, i32
  }
}

</mosaic_0001>

<bundles_post_ra>
// kernel: tpu_custom_call.1
= control target key start
LH: loop header
LB: loop body
LE: loop exit
PB: predicated region body
PF: predicated region fallthrough
CT: control target
= control target key end

     0   :  { %8 = vsyncpa [#allocation4], 0  ;;  %s920_s0 = inlined_call_operand.hbm [shape: f32[2,4,384], index: 0, kind: input, shape index: {}]   ;;  %s921_s1 = inlined_call_operand.vmem [shape: bf16[4,36], index: 1, kind: input, shape index: {}]   ;;  %s922_s2 = inlined_call_operand.vmem [shape: f32[4,1], index: 2, kind: input, shape index: {}]   ;;  %s923_s3 = inlined_call_operand.hbm [shape: f32[2,4,256], index: 3, kind: output, shape index: {}]  }
   0x1   :  { %9 = vsyncpa [#allocation5], 0  ;;  %s700_s12 = smov [#allocation3]   ;;  %s652_s16 = scalar_lea.hbm %s920_s0, 384 }
   0x2   :  { %s15_s13 = sshll.u32 %s700_s12, 4  ;;  %p653_p0 = scmp.ne.s32.totalorder %s920_s0, %s652_s16  ;;  %s16_s13 = int_to_ptr.vmem [resolvable:$true] %s15_s13 }
   0x3   :  { %p656_p1 = scmp.lt.u32.totalorder %s652_s16, %s920_s0 }
   0x5   :  { %p658_p2 = pnand %p656_p1, %p653_p0 }
   0x7   :  { %661 = shalt.err (!%p658_p2)
}
   0x8   :  { %s662_s21 = scalar_lea.vmem %s16_s13, 384  ;;  %p667_p4 = scmp.lt.s32.totalorder %s16_s13, %s16_s13 }
   0x9   :  { %p663_p3 = scmp.ne.s32.totalorder %s16_s13, %s662_s21  ;;  %p668_p5 = scmp.lt.s32.totalorder %s662_s21, %s662_s21 }
   0xb   :  { %p669_p6 = por %p668_p5, %p667_p4 }
   0xd   :  { %p670_p7 = pnand %p669_p6, %p663_p3 }
   0xf   :  { %673 = shalt.err (!%p670_p7)
}
  0x10   :  { %s701_s22 = smov 192   ;;  %s702_s23 = smov 12  }
  0x11   :  { %21 = dma.hbm_to_vmem [thread:$0]  %s920_s0, 384, %s16_s13, [#allocation4], %s701_s22, %s701_s22, %s702_s23  }
  0x12   :  { %696 = dma.done.wait [#allocation4], 384  }
  0x13   :  { %697 = vsyncadd [#allocation4], 4294966912  ;;  %v30_v0 = vlaneseq  ;;  %v292_v3 = vld [vmem:[#allocation3 + $0x14] sm:$0xf]  ;;  %v117_v4 = vld [vmem:[#allocation3 + $0x8] sm:$0xf] }
  0x14   :  { %s703_s26 = smov 96   ;;  %v752_v5 = vld [vmem:[#allocation3 + $0xc] sm:$0xff]  ;;  %v755_v7 = vld [vmem:[#allocation3] sm:$0xff]  ;;  %v93_v17 = vld [vmem:[#allocation3 + $0x8] sm:$0xf]  ;;  %s704_s0 = smov 124  }
  0x15   :  { %v747_v1 = vand.u32 127, %v30_v0  ;;  %300 = vrot.lane.b32.xlu1 %v292_v3, %s703_s26  ;;  %125 = vrot.lane.b32.xlu0 %v117_v4, %s703_s26  ;;  %v761_v9 = vcombine.high %v752_v5, %v752_v5  ;;  %v766_v10 = vcombine.high %v755_v7, %v755_v7  ;;  %v273_v18 = vld [vmem:[#allocation3 + $0x14] sm:$0xf]  ;;  %v630_v19 = vld [vmem:[#allocation3 + $0x8] ss:$0 sps:$4 sm:$0xff]   ;;  %s705_s27 = smov 126   ;;  %v77_v21 = vcombine.low %v755_v7, %v755_v7 }
  0x16   :  { %v633_v20 = vld [vmem:[#allocation3 + $0x14] ss:$0 sps:$4 sm:$0xff]   ;;  %v258_v22 = vcombine.low %v752_v5, %v752_v5  ;;  %s706_s28 = smov 92   ;;  %v161_v23 = vld [vmem:[#allocation3 + $0x8] sm:$0xf]  ;;  %s707_s29 = smov 64  }
  0x17   :  { %v750_v2 = vadd.s32 128, %v747_v1  ;;  %v37_v6 = vand.u32 15, %v747_v1  ;;  %v334_v24 = vld [vmem:[#allocation3 + $0x14] sm:$0xf]  ;;  %v187_v25 = vld [vmem:[#allocation3 + $0x8] sm:$0xf] }
  0x18   :  { %v359_v26 = vld [vmem:[#allocation3 + $0x14] sm:$0xf]  ;;  %v143_v27 = vld [vmem:[#allocation3 + $0x8] sm:$0xf]  ;;  %s708_s30 = smov 94   ;;  %s709_s4 = smov 62  }
  0x19   :  { %v44_v8 = vand.u32 15, %v750_v2  ;;  %296 = vrot.lane.b32.xlu1 %v752_v5, %s703_s26  ;;  %121 = vrot.lane.b32.xlu0 %v755_v7, %s703_s26  ;;  %vm770_vm0 = vcmp.ge.s32.totalorder %v37_v6, 2  ;;  %v634_v28 = vld [vmem:[#allocation3 + $0x8] ss:$0 sps:$4 sm:$0xff]   ;;  %v317_v29 = vld [vmem:[#allocation3 + $0x14] sm:$0xf] }
  0x1a   :  { %v69_v13 = vsel %vm770_vm0, %v755_v7, 0.0  ;;  %v250_v15 = vsel %vm770_vm0, %v752_v5, 0.0  ;;  %v635_v30 = vld [vmem:[#allocation3 + $0x14] ss:$0 sps:$4 sm:$0xff]   ;;  %s710_s5 = smov 60   ;;  %v711_v33 = vmov 0  }
  0x1b   :  { %vm776_vm1 = vcmp.ge.s32.totalorder %v44_v8, 2  ;;  %71 = vst [vmem:[#allocation2] sm:$0xf] %v69_v13  ;;  %252 = vst [vmem:[#allocation2 + $0x10] sm:$0xf] %v250_v15  ;;  %502 = vmatprep.mubr.bf16.mxu0 %v711_v33  ;;  %543 = vmatprep.mubr.bf16.mxu1 %v711_v33  ;;  %vm127_vm2 = vcmask 785408  }
  0x1c   :  { %v70_v14 = vsel %vm776_vm1, %v766_v10, 0.0  ;;  %v251_v16 = vsel %vm776_vm1, %v761_v9, 0.0  ;;  %v226_v31 = vld [vmem:[#allocation3 + $0x8] sm:$0xf]  ;;  %v396_v32 = vld [vmem:[#allocation3 + $0x14] sm:$0xf]  ;;  %627 = vset.pattern.permute.xlu0 %v711_v33 }
  0x1d   :  { %72 = vst [vmem:[#allocation2 + $0x8] sm:$0xf] %v70_v14  ;;  %253 = vst [vmem:[#allocation2 + $0x18] sm:$0xf] %v251_v16  ;;  %298 = vrot.lane.b32.xlu1 %v761_v9, %s703_s26  ;;  %123 = vrot.lane.b32.xlu0 %v766_v10, %s703_s26  ;;  %v447_v34 = vld [vmem:[%s922_s2] sm:$0xf] }
  0x1e   :  { %vm827_vm3 = vcmp.lt.s32.totalorder %v44_v8, 14  ;;  %vm107_vm4 = vcmask 1014784   ;;  %vm85_vm5 = vcmask 1031168   ;;  %vm848_vm6 = vcmp.lt.s32.totalorder %v37_v6, 14 }
  0x1f   :  { %vm171_vm7 = vcmask 752640   ;;  %vm197_vm8 = vcmask 523264   ;;  %vm153_vm9 = vcmask 769024   ;;  %vm218_vm10 = vcmask 506880  }
  0x20   :  { %vm236_vm11 = vcmask 490496   ;;  %vm457_vm12 = vcmask 1041408   ;;  %vm453_vm13 = vcmask 293888  }
  0x21   :  { %105 = vrot.lane.b32.xlu1 %v93_v17, %s704_s0  ;;  %103 = vrot.lane.b32.xlu0 %v766_v10, %s704_s0 }
  0x25   :  { %281 = vrot.lane.b32.xlu1 %v273_v18, %s704_s0  ;;  %279 = vrot.lane.b32.xlu0 %v761_v9, %s704_s0 }
  0x29   :  { %83 = vrot.lane.b32.xlu1 %v630_v19, %s705_s27  ;;  %81 = vrot.lane.b32.xlu0 %v755_v7, %s705_s27 }
  0x2d   :  { %262 = vrot.lane.b32.xlu1 %v752_v5, %s705_s27  ;;  %101 = vrot.lane.b32.xlu0 %v755_v7, %s704_s0 }
  0x31   :  { %277 = vrot.lane.b32.xlu1 %v752_v5, %s704_s0  ;;  %264 = vrot.lane.b32.xlu0 %v633_v20, %s705_s27 }
  0x35   :  { %167 = vrot.lane.b32.xlu1 %v766_v10, %s706_s28  ;;  %79 = vrot.lane.b32.xlu0 %v77_v21, %s705_s27 }
  0x39   :  { %260 = vrot.lane.b32.xlu1 %v258_v22, %s705_s27  ;;  %169 = vrot.lane.b32.xlu0 %v161_v23, %s706_s28 }
  0x3d   :  { %342 = vrot.lane.b32.xlu1 %v334_v24, %s706_s28  ;;  %340 = vrot.lane.b32.xlu0 %v761_v9, %s706_s28 }
  0x41   :  { %338 = vrot.lane.b32.xlu1 %v752_v5, %s706_s28  ;;  %165 = vrot.lane.b32.xlu0 %v755_v7, %s706_s28 }
  0x45   :  { %195 = vrot.lane.b32.xlu1 %v187_v25, %s707_s29  ;;  %193 = vrot.lane.b32.xlu0 %v766_v10, %s707_s29 }
  0x49   :  { %367 = vrot.lane.b32.xlu1 %v359_v26, %s707_s29  ;;  %365 = vrot.lane.b32.xlu0 %v761_v9, %s707_s29 }
  0x4d   :  { %151 = vrot.lane.b32.xlu1 %v143_v27, %s708_s30  ;;  %149 = vrot.lane.b32.xlu0 %v766_v10, %s708_s30 }
  0x51   :  { %214 = vrot.lane.b32.xlu1 %v755_v7, %s709_s4  ;;  %191 = vrot.lane.b32.xlu0 %v755_v7, %s707_s29 }
  0x55   :  { %323 = vrot.lane.b32.xlu1 %v761_v9, %s708_s30  ;;  %216 = vrot.lane.b32.xlu0 %v634_v28, %s709_s4 }
  0x59   :  { %363 = vrot.lane.b32.xlu1 %v752_v5, %s707_s29  ;;  %325 = vrot.lane.b32.xlu0 %v317_v29, %s708_s30 }
  0x5d   :  { %387 = vrot.lane.b32.xlu1 %v635_v30, %s709_s4  ;;  %385 = vrot.lane.b32.xlu0 %v752_v5, %s709_s4 }
  0x61   :  { %212 = vrot.lane.b32.xlu1 %v77_v21, %s709_s4  ;;  %147 = vrot.lane.b32.xlu0 %v755_v7, %s708_s30 }
  0x65   :  { %383 = vrot.lane.b32.xlu1 %v258_v22, %s709_s4  ;;  %321 = vrot.lane.b32.xlu0 %v752_v5, %s708_s30 }
  0x69   :  { %232 = vrot.lane.b32.xlu1 %v766_v10, %s710_s5  ;;  %230 = vrot.lane.b32.xlu0 %v755_v7, %s710_s5 }
  0x6d   :  { %400 = vrot.lane.b32.xlu1 %v752_v5, %s710_s5  ;;  %234 = vrot.lane.b32.xlu0 %v226_v31, %s710_s5 }
  0x71   :  { %404 = vrot.lane.b32.xlu1 %v396_v32, %s710_s5  ;;  %402 = vrot.lane.b32.xlu0 %v761_v9, %s710_s5 }
  0x75   :  { %450 = vperm.xlu0 %627, %v447_v34  }
  0x87   :  { %v301_v35 = vpop.permute.xlu1 %300  ;;  %v126_v36 = vpop.permute.xlu0 %125 }
  0x8b   :  { %v297_v37 = vpop.permute.xlu1 %296  ;;  %v122_v38 = vpop.permute.xlu0 %121 }
  0x8f   :  { %v299_v39 = vpop.permute.xlu1 %298  ;;  %v124_v40 = vpop.permute.xlu0 %123 }
  0x90   :  { %v302_v42 = vsel %vm127_vm2, %v297_v37, %v299_v39  ;;  %v303_v43 = vsel %vm127_vm2, %v299_v39, %v301_v35  ;;  %v128_v44 = vsel %vm127_vm2, %v122_v38, %v124_v40  ;;  %v129_v45 = vsel %vm127_vm2, %v124_v40, %v126_v36 }
  0x91   :  { %v306_v46 = vsel %vm770_vm0, %v302_v42, 0.0  ;;  %v307_v47 = vsel %vm776_vm1, %v303_v43, 0.0  ;;  %v132_v48 = vsel %vm770_vm0, %v128_v44, 0.0  ;;  %v133_v49 = vsel %vm776_vm1, %v129_v45, 0.0 }
  0x92   :  { %v310_v50 = vrot.slane %v306_v46, 4  ;;  %v311_v51 = vrot.slane %v307_v47, 4  ;;  %v136_v52 = vrot.slane %v132_v48, 4  ;;  %v137_v53 = vrot.slane %v133_v49, 4 }
  0x93   :  { %v106_v54 = vpop.permute.xlu1 %105  ;;  %v104_v55 = vpop.permute.xlu0 %103 }
  0x94   :  { %314 = vst [vmem:[#allocation2 + $0x30] sm:$0xf0] %v310_v50  ;;  %315 = vst [vmem:[#allocation2 + $0x38] sm:$0xf0] %v311_v51  ;;  %v109_v56 = vsel %vm107_vm4, %v104_v55, %v106_v54 }
  0x95   :  { %140 = vst [vmem:[#allocation2 + $0x20] sm:$0xf0] %v136_v52  ;;  %141 = vst [vmem:[#allocation2 + $0x28] sm:$0xf0] %v137_v53  ;;  %v113_v57 = vsel %vm827_vm3, %v109_v56, 0.0 }
  0x96   :  { %115 = vst [vmem:[#allocation2 + $0x28] sm:$0xf] %v113_v57 }
  0x97   :  { %v282_v58 = vpop.permute.xlu1 %281  ;;  %v280_v59 = vpop.permute.xlu0 %279 }
  0x98   :  { %v284_v60 = vsel %vm107_vm4, %v280_v59, %v282_v58 }
  0x99   :  { %v288_v61 = vsel %vm827_vm3, %v284_v60, 0.0 }
  0x9a   :  { %290 = vst [vmem:[#allocation2 + $0x38] sm:$0xf] %v288_v61 }
  0x9b   :  { %v84_v62 = vpop.permute.xlu1 %83  ;;  %v82_v63 = vpop.permute.xlu0 %81 }
  0x9c   :  { %v87_v0 = vsel %vm85_vm5, %v82_v63, %v84_v62 }
  0x9d   :  { %91 = vst [vmem:[#allocation2 + $0x8] sm:$0xf0] %v87_v0  ;;  %v419_v1 = vld [vmem:[#allocation2 + $0x28] sm:$0xff] }
  0x9f   :  { %v263_v3 = vpop.permute.xlu1 %262  ;;  %v102_v4 = vpop.permute.xlu0 %101 }
  0xa0   :  { %v108_v5 = vsel %vm107_vm4, %v102_v4, %v104_v55 }
  0xa1   :  { %v112_v7 = vsel %vm848_vm6, %v108_v5, 0.0  ;;  %v421_v24 = vld [vmem:[#allocation2 + $0x38] sm:$0xff] }
  0xa2   :  { %114 = vst [vmem:[#allocation2 + $0x20] sm:$0xf] %v112_v7 }
  0xa3   :  { %v278_v8 = vpop.permute.xlu1 %277  ;;  %v265_v9 = vpop.permute.xlu0 %264 }
  0xa4   :  { %v283_v10 = vsel %vm107_vm4, %v278_v8, %v280_v59  ;;  %v267_v13 = vsel %vm85_vm5, %v263_v3, %v265_v9  ;;  %v415_v14 = vld [vmem:[#allocation2 + $0x8] sm:$0xff] }
  0xa5   :  { %v287_v6 = vsel %vm848_vm6, %v283_v10, 0.0  ;;  %271 = vst [vmem:[#allocation2 + $0x18] sm:$0xf0] %v267_v13  ;;  %v435_v15 = vpack.c.bf16 %v419_v1, %v415_v14 }
  0xa6   :  { %289 = vst [vmem:[#allocation2 + $0x30] sm:$0xf] %v287_v6 }
  0xa7   :  { %v168_v16 = vpop.permute.xlu1 %167  ;;  %v80_v17 = vpop.permute.xlu0 %79  ;;  %470 = vmatprep.subr.bf16.mxu0 %v435_v15 }
  0xa8   :  { %v86_v18 = vsel %vm85_vm5, %v80_v17, %v82_v63 }
  0xa9   :  { %90 = vst [vmem:[#allocation2] sm:$0xf0] %v86_v18  ;;  %v418_v32 = vld [vmem:[#allocation2 + $0x20] sm:$0xff] }
  0xab   :  { %v261_v19 = vpop.permute.xlu1 %260  ;;  %v170_v20 = vpop.permute.xlu0 %169 }
  0xac   :  { %v266_v21 = vsel %vm85_vm5, %v261_v19, %v263_v3  ;;  %v173_v22 = vsel %vm171_vm7, %v168_v16, %v170_v20  ;;  %v417_v23 = vld [vmem:[#allocation2 + $0x18] sm:$0xff] }
  0xad   :  { %270 = vst [vmem:[#allocation2 + $0x10] sm:$0xf0] %v266_v21  ;;  %v177_v25 = vsel %vm827_vm3, %v173_v22, 0.0  ;;  %v437_v26 = vpack.c.bf16 %v421_v24, %v417_v23  ;;  %v420_v42 = vld [vmem:[#allocation2 + $0x30] sm:$0xff] }
  0xae   :  { %v181_v27 = vrot.slane %v177_v25, 4 }
  0xaf   :  { %v343_v28 = vpop.permute.xlu1 %342  ;;  %511 = vmatprep.subr.bf16.mxu1 %v437_v26  ;;  %v341_v29 = vpop.permute.xlu0 %340 }
  0xb0   :  { %185 = vst [vmem:[#allocation2 + $0x48] sm:$0xf0] %v181_v27  ;;  %v345_v30 = vsel %vm171_vm7, %v341_v29, %v343_v28  ;;  %v414_v31 = vld [vmem:[#allocation2] sm:$0xff] }
  0xb1   :  { %v349_v33 = vsel %vm827_vm3, %v345_v30, 0.0  ;;  %v434_v34 = vpack.c.bf16 %v418_v32, %v414_v31 }
  0xb2   :  { %v353_v35 = vrot.slane %v349_v33, 4 }
  0xb3   :  { %v339_v36 = vpop.permute.xlu1 %338  ;;  %v166_v37 = vpop.permute.xlu0 %165  ;;  %471 = vmatpush1.bf16.msra.mxu0 %v434_v34 }
  0xb4   :  { %357 = vst [vmem:[#allocation2 + $0x58] sm:$0xf0] %v353_v35  ;;  %v344_v38 = vsel %vm171_vm7, %v339_v36, %v341_v29  ;;  %v172_v39 = vsel %vm171_vm7, %v166_v37, %v168_v16  ;;  %v416_v40 = vld [vmem:[#allocation2 + $0x10] sm:$0xff] }
  0xb5   :  { %v348_v43 = vsel %vm848_vm6, %v344_v38, 0.0  ;;  %v176_v44 = vsel %vm848_vm6, %v172_v39, 0.0  ;;  %v436_v45 = vpack.c.bf16 %v420_v42, %v416_v40 }
  0xb6   :  { %v352_v46 = vrot.slane %v348_v43, 4  ;;  %v180_v47 = vrot.slane %v176_v44, 4 }
  0xb7   :  { %v196_v48 = vpop.permute.xlu1 %195  ;;  %512 = vmatpush1.bf16.msra.mxu1 %v436_v45  ;;  %v194_v49 = vpop.permute.xlu0 %193 }
  0xb8   :  { %356 = vst [vmem:[#allocation2 + $0x50] sm:$0xf0] %v352_v46  ;;  %184 = vst [vmem:[#allocation2 + $0x40] sm:$0xf0] %v180_v47  ;;  %v199_v50 = vsel %vm197_vm8, %v194_v49, %v196_v48 }
  0xb9   :  { %v203_v51 = vsel %vm776_vm1, %v199_v50, 0.0 }
  0xba   :  { %205 = vst [vmem:[#allocation2 + $0x68] sm:$0xf] %v203_v51  ;;  %v446_v51 = vld [vmem:[%s921_s1] sm:$0x3]  ;;  %s712_s1 = smov [#allocation6]  }
  0xbb   :  { %v368_v52 = vpop.permute.xlu1 %367  ;;  %v366_v53 = vpop.permute.xlu0 %365  ;;  %s592_s9 = sshll.u32 %s712_s1, 4  ;;  %s593_s9 = int_to_ptr.vmem [resolvable:$true] %s592_s9 }
  0xbc   :  { %v370_v54 = vsel %vm197_vm8, %v366_v53, %v368_v52  ;;  %s674_s10 = scalar_lea.vmem %s593_s9, 256  ;;  %p679_p9 = scmp.lt.s32.totalorder %s593_s9, %s593_s9 }
  0xbd   :  { %v374_v55 = vsel %vm776_vm1, %v370_v54, 0.0  ;;  %p675_p8 = scmp.ne.s32.totalorder %s593_s9, %s674_s10  ;;  %p680_p10 = scmp.lt.s32.totalorder %s674_s10, %s674_s10 }
  0xbe   :  { %376 = vst [vmem:[#allocation2 + $0x78] sm:$0xf] %v374_v55 }
  0xbf   :  { %v152_v56 = vpop.permute.xlu1 %151  ;;  %v150_v57 = vpop.permute.xlu0 %149  ;;  %p681_p11 = por %p680_p10, %p679_p9 }
  0xc0   :  { %v155_v58 = vsel %vm153_vm9, %v150_v57, %v152_v56 }
  0xc1   :  { %159 = vst [vmem:[#allocation2 + $0x48] sm:$0xf] %v155_v58  ;;  %p682_p12 = pnand %p681_p11, %p675_p8 }
  0xc3   :  { %v215_v59 = vpop.permute.xlu1 %214  ;;  %v192_v60 = vpop.permute.xlu0 %191 }
  0xc4   :  { %v198_v61 = vsel %vm197_vm8, %v192_v60, %v194_v49 }
  0xc5   :  { %v202_v62 = vsel %vm770_vm0, %v198_v61, 0.0 }
  0xc6   :  { %204 = vst [vmem:[#allocation2 + $0x60] sm:$0xf] %v202_v62 }
  0xc7   :  { %v324_v63 = vpop.permute.xlu1 %323  ;;  %v217_v0 = vpop.permute.xlu0 %216 }
  0xc8   :  { %v220_v12 = vsel %vm218_vm10, %v215_v59, %v217_v0  ;;  %v423_v14 = vld [vmem:[#allocation2 + $0x48] sm:$0xff] }
  0xc9   :  { %224 = vst [vmem:[#allocation2 + $0x68] sm:$0xf0] %v220_v12 }
  0xcb   :  { %v364_v3 = vpop.permute.xlu1 %363  ;;  %v326_v4 = vpop.permute.xlu0 %325 }
  0xcc   :  { %v369_v5 = vsel %vm197_vm8, %v364_v3, %v366_v53  ;;  %v328_v7 = vsel %vm153_vm9, %v324_v63, %v326_v4 }
  0xcd   :  { %v373_v8 = vsel %vm770_vm0, %v369_v5, 0.0  ;;  %332 = vst [vmem:[#allocation2 + $0x58] sm:$0xf] %v328_v7 }
  0xce   :  { %375 = vst [vmem:[#allocation2 + $0x70] sm:$0xf] %v373_v8 }
  0xcf   :  { %v388_v9 = vpop.permute.xlu1 %387  ;;  %v386_v10 = vpop.permute.xlu0 %385 }
  0xd0   :  { %v390_v13 = vsel %vm218_vm10, %v386_v10, %v388_v9  ;;  %v427_v1 = vld [vmem:[#allocation2 + $0x68] sm:$0xff] }
  0xd1   :  { %394 = vst [vmem:[#allocation2 + $0x78] sm:$0xf0] %v390_v13  ;;  %v439_v6 = vpack.c.bf16 %v427_v1, %v423_v14 }
  0xd3   :  { %v213_v15 = vpop.permute.xlu1 %212  ;;  %v148_v16 = vpop.permute.xlu0 %147  ;;  %472 = vmatprep.subr.bf16.mxu0 %v439_v6 }
  0xd4   :  { %v219_v17 = vsel %vm218_vm10, %v213_v15, %v215_v59  ;;  %v154_v18 = vsel %vm153_vm9, %v148_v16, %v150_v57  ;;  %v425_v22 = vld [vmem:[#allocation2 + $0x58] sm:$0xff] }
  0xd5   :  { %223 = vst [vmem:[#allocation2 + $0x60] sm:$0xf0] %v219_v17  ;;  %158 = vst [vmem:[#allocation2 + $0x40] sm:$0xf] %v154_v18 }
  0xd7   :  { %v384_v11 = vpop.permute.xlu1 %383  ;;  %v322_v19 = vpop.permute.xlu0 %321 }
  0xd8   :  { %v389_v20 = vsel %vm218_vm10, %v384_v11, %v386_v10  ;;  %v327_v21 = vsel %vm153_vm9, %v322_v19, %v324_v63  ;;  %v429_v23 = vld [vmem:[#allocation2 + $0x78] sm:$0xff] }
  0xd9   :  { %393 = vst [vmem:[#allocation2 + $0x70] sm:$0xf0] %v389_v20  ;;  %331 = vst [vmem:[#allocation2 + $0x50] sm:$0xf] %v327_v21  ;;  %v441_v24 = vpack.c.bf16 %v429_v23, %v425_v22 }
  0xdb   :  { %v233_v25 = vpop.permute.xlu1 %232  ;;  %513 = vmatprep.subr.bf16.mxu1 %v441_v24  ;;  %v231_v26 = vpop.permute.xlu0 %230 }
  0xdc   :  { %v237_v27 = vsel %vm236_vm11, %v231_v26, %v233_v25  ;;  %v422_v28 = vld [vmem:[#allocation2 + $0x40] sm:$0xff] }
  0xdd   :  { %v426_v29 = vld [vmem:[#allocation2 + $0x60] sm:$0xff]  ;;  %v241_v30 = vsel %vm848_vm6, %v237_v27, 0.0 }
  0xde   :  { %v438_v31 = vpack.c.bf16 %v426_v29, %v422_v28  ;;  %243 = vst [vmem:[#allocation2 + $0x80] sm:$0xf] %v241_v30 }
  0xdf   :  { %v401_v32 = vpop.permute.xlu1 %400  ;;  %v235_v33 = vpop.permute.xlu0 %234 }
  0xe0   :  { %473 = vmatpush1.bf16.msra.mxu0 %v438_v31  ;;  %v238_v34 = vsel %vm236_vm11, %v233_v25, %v235_v33  ;;  %v424_v35 = vld [vmem:[#allocation2 + $0x50] sm:$0xff] }
  0xe1   :  { %v428_v36 = vld [vmem:[#allocation2 + $0x70] sm:$0xff]  ;;  %v242_v37 = vsel %vm827_vm3, %v238_v34, 0.0 }
  0xe2   :  { %v440_v38 = vpack.c.bf16 %v428_v36, %v424_v35  ;;  %244 = vst [vmem:[#allocation2 + $0x88] sm:$0xf] %v242_v37 }
  0xe3   :  { %v405_v39 = vpop.permute.xlu1 %404  ;;  %v403_v40 = vpop.permute.xlu0 %402 }
  0xe4   :  { %514 = vmatpush1.bf16.msra.mxu1 %v440_v38  ;;  %v406_v42 = vsel %vm236_vm11, %v401_v32, %v403_v40  ;;  %v407_v43 = vsel %vm236_vm11, %v403_v40, %v405_v39 }
  0xe5   :  { %v410_v44 = vsel %vm848_vm6, %v406_v42, 0.0  ;;  %v411_v45 = vsel %vm827_vm3, %v407_v43, 0.0  ;;  %v430_v46 = vld [vmem:[#allocation2 + $0x80] sm:$0xf] }
  0xe6   :  { %412 = vst [vmem:[#allocation2 + $0x90] sm:$0xf] %v410_v44  ;;  %413 = vst [vmem:[#allocation2 + $0x98] sm:$0xf] %v411_v45  ;;  %v442_v47 = vpack.c.bf16 %v430_v46, %v430_v46 }
  0xe8   :  { %v459_v50 = vsel %vm457_vm12, %v442_v47, 0 }
  0xe9   :  { %v431_v48 = vld [vmem:[#allocation2 + $0x88] sm:$0xf] }
  0xea   :  { %v443_v49 = vpack.c.bf16 %v431_v48, %v431_v48 }
  0xec   :  { %604 = vmatprep.subr.msk.bf16.mxu0 %vm457_vm12, %v443_v49 }
  0xed   :  { %475 = vmatpush1.bf16.msra.mxu0 %v459_v50  ;;  %v433_v52 = vld [vmem:[#allocation2 + $0x98] sm:$0xf]  ;;  %v432_v2 = vld [vmem:[#allocation2 + $0x90] sm:$0xf] }
  0xee   :  { %v445_v53 = vpack.c.bf16 %v433_v52, %v433_v52  ;;  %v444_v41 = vpack.c.bf16 %v432_v2, %v432_v2 }
  0xf0   :  { %606 = vmatprep.subr.msk.bf16.mxu1 %vm457_vm12, %v445_v53  ;;  %605 = vmatmul.mubr.msk.bf16.vlgmr.msra.gmra.mrb[0].mxu0 %vm453_vm13, %v446_v51  ;;  %v465_v54 = vsel %vm457_vm12, %v444_v41, 0 }
  0xf1   :  { %516 = vmatpush1.bf16.msra.mxu1 %v465_v54 }
  0xf4   :  { %607 = vmatmul.mubr.msk.bf16.vlgmr.msra.gmra.mrb[0].mxu1 %vm453_vm13, %v446_v51  ;;  %v451_v55 = vpop.permute.xlu0 %450 }
 0x1c3   :  { %v504_v56 = vpop.f32.mrb[0].mxu0 }
 0x1c4   :  { %v506_v57 = vpop.f32.mrb[1].mxu0  ;;  %v505_v58 = vadd.f32 %v504_v56, %v451_v55 }
 0x1c5   :  { %v508_v59 = vpop.f32.mrb[2].mxu0  ;;  %v507_v60 = vadd.f32 %v506_v57, %v451_v55 }
 0x1c6   :  { %v608_v61 = vmul.f32 -1.442695, %v505_v58  ;;  %v509_v62 = vpop.f32.mrb[3].mxu0 }
 0x1c7   :  { %v545_v63 = vpop.f32.mrb[0].mxu1  ;;  %v609_v0 = vmul.f32 -1.442695, %v507_v60 }
 0x1c8   :  { %v546_v12 = vadd.f32 %v545_v63, %v451_v55  ;;  %636 = vpow2.f32 %v608_v61  ;;  %v547_v3 = vpop.f32.mrb[1].mxu1 }
 0x1c9   :  { %638 = vpow2.f32 %v609_v0  ;;  %v548_v4 = vadd.f32 %v547_v3, %v451_v55  ;;  %v549_v5 = vpop.f32.mrb[2].mxu1 }
 0x1ca   :  { %v610_v7 = vmul.f32 -1.442695, %v546_v12  ;;  %v550_v8 = vpop.f32.mrb[3].mxu1 }
 0x1cb   :  { %v611_v9 = vmul.f32 -1.442695, %v548_v4 }
 0x1cc   :  { %640 = vpow2.f32 %v610_v7 }
 0x1cd   :  { %642 = vpow2.f32 %v611_v9 }
 0x1d2   :  { %v637_v10 = vpop.eup %636 }
 0x1d3   :  { %v639_v13 = vpop.eup %638  ;;  %v564_v14 = vadd.f32 1.0, %v637_v10 }
 0x1d4   :  { %v565_v1 = vadd.f32 1.0, %v639_v13 }
 0x1d5   :  { %644 = vrcp.f32 %v564_v14 }
 0x1d6   :  { %v641_v6 = vpop.eup %640  ;;  %646 = vrcp.f32 %v565_v1 }
 0x1d7   :  { %v643_v15 = vpop.eup %642  ;;  %v566_v16 = vadd.f32 1.0, %v641_v6 }
 0x1d8   :  { %v567_v17 = vadd.f32 1.0, %v643_v15 }
 0x1d9   :  { %648 = vrcp.f32 %v566_v16 }
 0x1da   :  { %650 = vrcp.f32 %v567_v17 }
 0x1df   :  { %v645_v18 = vpop.eup %644 }
 0x1e0   :  { %v647_v11 = vpop.eup %646 }
 0x1e1   :  { %v578_v19 = vcombine.low %v645_v18, %v647_v11 }
 0x1e3   :  { %v649_v20 = vpop.eup %648  ;;  %580 = vst [vmem:[#allocation6] sm:$0xff] %v578_v19 }
 0x1e4   :  { %v651_v21 = vpop.eup %650 }
 0x1e5   :  { %v583_v22 = vcombine.low %v649_v20, %v651_v21 }
 0x1e7   :  { %586 = vst [vmem:[#allocation6 + $0x8] sm:$0xff] %v583_v22 }
 0x1e8   :  { %685 = shalt.err (!%p682_p12)
}
 0x1e9   :  { %s686_s13 = scalar_lea.hbm %s923_s3, 256 }
 0x1ea   :  { %p687_p13 = scmp.ne.s32.totalorder %s923_s3, %s686_s13  ;;  %p690_p0 = scmp.lt.u32.totalorder %s686_s13, %s923_s3 }
 0x1ec   :  { %p692_p1 = pnand %p690_p0, %p687_p13 }
 0x1ee   :  { %695 = shalt.err (!%p692_p1)
}
 0x1ef   :  { %s713_s18 = smov 128   ;;  %s714_s19 = smov 8  }
 0x1f0   :  { %598 = dma.vmem_to_hbm [thread:$0]  %s593_s9, 256, %s923_s3, [#allocation5], %s713_s18, %s713_s18, %s714_s19  }
 0x1f1   :  { %698 = dma.done.wait [#allocation5], 256  }
 0x1f2   :  { %699 = vsyncadd [#allocation5], 4294967040 }
 0x1f3   :  { %602 = vsyncpa [#allocation4], 1 }
 0x1f4   :  { %603 = vsyncpa [#allocation5], 1 }

</bundles_post_ra>
